<compile_context>
chip_gen: v6e
topology: v6e:2x2x1
jax: 0.10.0
libtpu: 0.0.40
codegen_flags: <defaults>
</compile_context>

<pallas_src>
import functools

import jax
import jax.numpy as jnp
from jax.experimental import pallas as pl
from jax.experimental.pallas import tpu as pltpu

NUM_AGENTS = 2
IN_DIM = 2 * NUM_AGENTS + 1          # 5
H1, H2 = 32, 16
NUM_ACTIONS = 5

LANES = 128                          # padded feature width of h1 / h2 / logits
W1_ROWS = 8                          # fc1 weight rows padded to one sublane group
NEG_BIG = -1e30                      # masks padded logit lanes out of the softmax

# Packed weight slab rows: [0:8) = W1 (rows >= 5 zero), [8:136) = W2, [136:264) = W3.
W1_R0 = 0
W2_R0 = W1_ROWS
W3_R0 = W1_ROWS + LANES
W_ROWS = W1_ROWS + LANES + LANES     # 264 x 128 x f32 = 132 KiB, VMEM-resident
MAX_TB = 4096                        # rows per grid step cap (~4.5 MiB/step VMEM)


def policy_net_kernel(x_ref, w_ref, b_ref, out_ref):
    """Fused 3-layer MLP + exact softmax for one batch tile; params stay resident."""
    x = x_ref[...]                                     # (TB, 5) f32, unpadded features

    w1 = w_ref[W1_R0:W1_R0 + W1_ROWS, :]               # (8, 128), rows >= IN_DIM are 0
    w2 = w_ref[W2_R0:W2_R0 + LANES, :]                 # (128, 128)
    w3 = w_ref[W3_R0:W3_R0 + LANES, :]                 # (128, 128)
    b = b_ref[...]                                     # (8, 128)
    b1 = b[0:1, :]
    b2 = b[1:2, :]
    b3 = b[2:3, :]                                     # padded lanes hold -1e30

    # fc1 (K = IN_DIM = 5): VPU outer-product accumulation instead of a tiny-K
    # MXU matmul -- exact f32 and no feature padding of x required.
    z1 = x[:, 0:1] * w1[0:1, :]
    for k in range(1, IN_DIM):
        z1 = z1 + x[:, k:k + 1] * w1[k:k + 1, :]
    h1 = jnp.maximum(z1 + b1, 0.0)                     # (TB, 128); lanes >= 32 stay 0

    # fc2 + ReLU (MXU)
    h2 = jnp.maximum(jnp.dot(h1, w2, preferred_element_type=jnp.float32) + b2, 0.0)
    # fc3 logits (padded lanes ~ -1e30 -> exp() == 0, excluded from softmax)
    logits = jnp.dot(h2, w3, preferred_element_type=jnp.float32) + b3

    # numerically stable softmax over the feature axis; EXACT normalization
    # (these probs feed log-prob terms in the A2C loss, so no approx reciprocal).
    m = jnp.max(logits, axis=1, keepdims=True)
    e = jnp.exp(logits - m)
    denom = jnp.sum(e, axis=1, keepdims=True)
    out_ref[...] = e / denom

    # TODO(synk): fuse categorical action sampling (pltpu.prng_seed /
    # prng_random_bits) so the (Bp, 128) prob slab never leaves VMEM during
    # rollouts -- removes most of the HBM writeback (largest term on v5e).


def _round_up(n, m):
    return ((n + m - 1) // m) * m


def _cdiv(a, b):
    return -(-a // b)


def _choose_tiling(batch, max_tb, target_tiles):
    """Pick (rows-per-tile, padded batch, grid). Tile rows are a multiple of 8."""
    max_tb = max(8, (max_tb // 8) * 8)           # guard: sublane-aligned tile
    b8 = _round_up(batch, 8)                     # <= 7 garbage rows from this pad
    if b8 <= 8 or target_tiles <= 1:
        tb = min(b8, max_tb)
        grid = _cdiv(b8, tb)
        return tb, grid * tb, grid
    grid = max(target_tiles, _cdiv(b8, max_tb))  # >= 2 steps -> both v7x TCs busy
    tb = _round_up(_cdiv(b8, grid), 8)
    grid = _cdiv(b8, tb)
    return tb, grid * tb, grid


def pack_params(params):
    """Pack (w1,b1,w2,b2,w3,b3) into one padded weight slab + one bias slab."""
    w1, b1, w2, b2, w3, b3 = params              # w*: (in, out), b*: (out,)
    w = jnp.zeros((W_ROWS, LANES), jnp.float32)
    w = w.at[W1_R0:W1_R0 + IN_DIM, 0:H1].set(w1)
    w = w.at[W2_R0:W2_R0 + H1, 0:H2].set(w2)
    w = w.at[W3_R0:W3_R0 + H2, 0:NUM_ACTIONS].set(w3)

    b = jnp.zeros((8, LANES), jnp.float32)
    b = b.at[0, 0:H1].set(b1)
    b = b.at[1, 0:H2].set(b2)
    b = b.at[2, :].set(NEG_BIG)                  # kill padded logit lanes
    b = b.at[2, 0:NUM_ACTIONS].set(b3)
    return w, b


@functools.partial(jax.jit, static_argnames=("max_tb", "target_tiles"))
def policy_net_forward(x, w_packed, b_packed, *, max_tb=MAX_TB, target_tiles=2):
    """x: (B, IN_DIM) f32. Returns softmax probs; dim 0 squeezed if B == 1.

    target_tiles=2 keeps both v7x TensorCores busy via the "parallel" grid axis;
    on single-TC parts (v5e/v6e) pass target_tiles=1 to collapse the grid to one
    step and save the per-step overhead.
    """
    assert x.ndim == 2 and x.shape[1] == IN_DIM
    B = x.shape[0]
    x = x.astype(jnp.float32)

    TB, Bp, grid = _choose_tiling(B, max_tb, target_tiles)
    if Bp != B:
        x = jnp.pad(x, ((0, Bp - B), (0, 0)))    # batch-row pad only; no feature pad

    flops = 2 * Bp * (IN_DIM * LANES + LANES * LANES + LANES * LANES)
    bytes_accessed = 4 * (x.size + w_packed.size + b_packed.size + Bp * LANES)

    out = pl.pallas_call(
        policy_net_kernel,
        out_shape=jax.ShapeDtypeStruct((Bp, LANES), jnp.float32),
        grid=(grid,),
        in_specs=[
            pl.BlockSpec((TB, IN_DIM), lambda i: (i, 0)),      # batch tile, raw feats
            pl.BlockSpec((W_ROWS, LANES), lambda i: (0, 0)),   # resident packed weights
            pl.BlockSpec((8, LANES), lambda i: (0, 0)),        # resident packed biases
        ],
        out_specs=pl.BlockSpec((TB, LANES), lambda i: (i, 0)),  # lane-dense output slab
        compiler_params=pltpu.CompilerParams(
            dimension_semantics=("parallel",)),
        cost_estimate=pl.CostEstimate(
            flops=flops, transcendentals=Bp * LANES, bytes_accessed=bytes_accessed),
    )(x, w_packed, b_packed)

    probs = out[:B, :NUM_ACTIONS]
    if B == 1:                 # torch: x.squeeze(0) drops dim 0 only when it has size 1
        probs = probs[0]
    return probs


def init_params(key):
    """torch.nn.Linear-style init (uniform +-1/sqrt(fan_in)); W stored as (in, out)."""
    ks = jax.random.split(key, 6)

    def linear(kw, kb, fan_in, fan_out):
        bound = 1.0 / jnp.sqrt(jnp.float32(fan_in))
        w = jax.random.uniform(kw, (fan_in, fan_out), jnp.float32, -bound, bound)
        b = jax.random.uniform(kb, (fan_out,), jnp.float32, -bound, bound)
        return w, b

    w1, b1 = linear(ks[0], ks[1], IN_DIM, H1)
    w2, b2 = linear(ks[2], ks[3], H1, H2)
    w3, b3 = linear(ks[4], ks[5], H2, NUM_ACTIONS)
    return (w1, b1, w2, b2, w3, b3)


if __name__ == "__main__":
    key = jax.random.PRNGKey(0)
    k_params, k_x = jax.random.split(key)

    params = init_params(k_params)
    w_packed, b_packed = pack_params(params)

    def reference(xb):
        w1, b1, w2, b2, w3, b3 = params
        hi = jnp.maximum(jnp.dot(xb, w1, precision="highest") + b1, 0.0)
        hi = jnp.maximum(jnp.dot(hi, w2, precision="highest") + b2, 0.0)
        return jax.nn.softmax(jnp.dot(hi, w3, precision="highest") + b3, axis=1)

    # Small rollout-style batch: 32 states -> TB=16, grid=2 ("parallel").
    B = 32
    x = jax.random.normal(k_x, (B, IN_DIM), dtype=jnp.float32)

    probs = jax.block_until_ready(policy_net_forward(x, w_packed, b_packed))
    assert probs.shape == (B, NUM_ACTIONS)
    assert bool(jnp.all(jnp.isfinite(probs)))
    assert jnp.allclose(jnp.sum(probs, axis=1), 1.0, atol=1e-5)
    assert jnp.allclose(probs, reference(x), rtol=5e-3, atol=1e-5)

    # Ragged batch (exercises batch-row padding; padded rows are sliced off).
    x3 = x[:3]
    p3 = jax.block_until_ready(policy_net_forward(x3, w_packed, b_packed))
    assert p3.shape == (3, NUM_ACTIONS)
    assert jnp.allclose(jnp.sum(p3, axis=1), 1.0, atol=1e-5)
    assert jnp.allclose(p3, reference(x3), rtol=5e-3, atol=1e-5)

    # Single-state path (torch semantics: softmax(dim=1) then squeeze(0)).
    p1 = jax.block_until_ready(policy_net_forward(x[:1], w_packed, b_packed))
    assert p1.shape == (NUM_ACTIONS,)
    assert jnp.allclose(jnp.sum(p1), 1.0, atol=1e-5)
    assert jnp.allclose(p1, reference(x[:1])[0], rtol=5e-3, atol=1e-5)

    print("KERNEL_OK")
</pallas_src>

<mosaic_0001>
module attributes {stable_mosaic.version = 11 : i64} {
  func.func @policy_net_kernel(%arg0: i32, %arg1: memref<16x5xf32, #tpu.memory_space<vmem>>, %arg2: memref<264x128xf32, #tpu.memory_space<vmem>>, %arg3: memref<8x128xf32, #tpu.memory_space<vmem>>, %arg4: memref<16x128xf32, #tpu.memory_space<vmem>>) attributes {dimension_semantics = [#tpu.dimension_semantics<parallel>], iteration_bounds = array<i64: 2>, scalar_prefetch = 0 : i64, scratch_operands = 0 : i64, tpu.core_type = #tpu.core_type<tc>, window_params = [{transform_indices = @transform_0, window_bounds = array<i64: 16, 5>}, {pipeline_mode = #tpu.pipeline_mode<synchronous>, transform_indices = @transform_1, window_bounds = array<i64: 264, 128>}, {pipeline_mode = #tpu.pipeline_mode<synchronous>, transform_indices = @transform_2, window_bounds = array<i64: 8, 128>}, {transform_indices = @transform_3, window_bounds = array<i64: 16, 128>}]} {
    %c0 = arith.constant 0 : index
    %c0_0 = arith.constant 0 : index
    %0 = vector.load %arg1[%c0, %c0_0] : memref<16x5xf32, #tpu.memory_space<vmem>>, vector<16x5xf32>
    %c0_1 = arith.constant 0 : index
    %c0_2 = arith.constant 0 : index
    %1 = vector.load %arg2[%c0_1, %c0_2] : memref<264x128xf32, #tpu.memory_space<vmem>>, vector<8x128xf32>
    %c8 = arith.constant 8 : index
    %c0_3 = arith.constant 0 : index
    %2 = vector.load %arg2[%c8, %c0_3] : memref<264x128xf32, #tpu.memory_space<vmem>>, vector<128x128xf32>
    %c136 = arith.constant 136 : index
    %c0_4 = arith.constant 0 : index
    %3 = vector.load %arg2[%c136, %c0_4] : memref<264x128xf32, #tpu.memory_space<vmem>>, vector<128x128xf32>
    %c0_5 = arith.constant 0 : index
    %c0_6 = arith.constant 0 : index
    %4 = vector.load %arg3[%c0_5, %c0_6] : memref<8x128xf32, #tpu.memory_space<vmem>>, vector<8x128xf32>
    %5 = vector.extract_strided_slice %4 {offsets = [0, 0], sizes = [1, 128], strides = [1, 1]} : vector<8x128xf32> to vector<1x128xf32>
    %6 = vector.extract_strided_slice %4 {offsets = [1, 0], sizes = [1, 128], strides = [1, 1]} : vector<8x128xf32> to vector<1x128xf32>
    %7 = vector.extract_strided_slice %4 {offsets = [2, 0], sizes = [1, 128], strides = [1, 1]} : vector<8x128xf32> to vector<1x128xf32>
    %8 = vector.extract_strided_slice %0 {offsets = [0, 0], sizes = [16, 1], strides = [1, 1]} : vector<16x5xf32> to vector<16x1xf32>
    %9 = vector.extract_strided_slice %1 {offsets = [0, 0], sizes = [1, 128], strides = [1, 1]} : vector<8x128xf32> to vector<1x128xf32>
    %10 = vector.broadcast %8 : vector<16x1xf32> to vector<16x128xf32>
    %11 = vector.broadcast %9 : vector<1x128xf32> to vector<16x128xf32>
    %12 = arith.mulf %10, %11 : vector<16x128xf32>
    %13 = vector.extract_strided_slice %0 {offsets = [0, 1], sizes = [16, 1], strides = [1, 1]} : vector<16x5xf32> to vector<16x1xf32>
    %14 = vector.extract_strided_slice %1 {offsets = [1, 0], sizes = [1, 128], strides = [1, 1]} : vector<8x128xf32> to vector<1x128xf32>
    %15 = vector.broadcast %13 : vector<16x1xf32> to vector<16x128xf32>
    %16 = vector.broadcast %14 : vector<1x128xf32> to vector<16x128xf32>
    %17 = arith.mulf %15, %16 : vector<16x128xf32>
    %18 = arith.addf %12, %17 : vector<16x128xf32>
    %19 = vector.extract_strided_slice %0 {offsets = [0, 2], sizes = [16, 1], strides = [1, 1]} : vector<16x5xf32> to vector<16x1xf32>
    %20 = vector.extract_strided_slice %1 {offsets = [2, 0], sizes = [1, 128], strides = [1, 1]} : vector<8x128xf32> to vector<1x128xf32>
    %21 = vector.broadcast %19 : vector<16x1xf32> to vector<16x128xf32>
    %22 = vector.broadcast %20 : vector<1x128xf32> to vector<16x128xf32>
    %23 = arith.mulf %21, %22 : vector<16x128xf32>
    %24 = arith.addf %18, %23 : vector<16x128xf32>
    %25 = vector.extract_strided_slice %0 {offsets = [0, 3], sizes = [16, 1], strides = [1, 1]} : vector<16x5xf32> to vector<16x1xf32>
    %26 = vector.extract_strided_slice %1 {offsets = [3, 0], sizes = [1, 128], strides = [1, 1]} : vector<8x128xf32> to vector<1x128xf32>
    %27 = vector.broadcast %25 : vector<16x1xf32> to vector<16x128xf32>
    %28 = vector.broadcast %26 : vector<1x128xf32> to vector<16x128xf32>
    %29 = arith.mulf %27, %28 : vector<16x128xf32>
    %30 = arith.addf %24, %29 : vector<16x128xf32>
    %31 = vector.extract_strided_slice %0 {offsets = [0, 4], sizes = [16, 1], strides = [1, 1]} : vector<16x5xf32> to vector<16x1xf32>
    %32 = vector.extract_strided_slice %1 {offsets = [4, 0], sizes = [1, 128], strides = [1, 1]} : vector<8x128xf32> to vector<1x128xf32>
    %33 = vector.broadcast %31 : vector<16x1xf32> to vector<16x128xf32>
    %34 = vector.broadcast %32 : vector<1x128xf32> to vector<16x128xf32>
    %35 = arith.mulf %33, %34 : vector<16x128xf32>
    %36 = arith.addf %30, %35 : vector<16x128xf32>
    %37 = vector.broadcast %5 : vector<1x128xf32> to vector<16x128xf32>
    %38 = arith.addf %36, %37 : vector<16x128xf32>
    %cst = arith.constant 0.000000e+00 : f32
    %39 = vector.broadcast %cst : f32 to vector<16x128xf32>
    %40 = arith.maximumf %38, %39 : vector<16x128xf32>
    %cst_7 = arith.constant dense<0.000000e+00> : vector<16x128xf32>
    %41 = tpu.matmul %40, %2, %cst_7 {dimension_numbers = #tpu.dot_dimension_numbers<[1], [0], [0], [1], [0, 0, 1, 1], [], []>} : vector<16x128xf32>, vector<128x128xf32>, vector<16x128xf32> -> vector<16x128xf32>
    %42 = vector.broadcast %6 : vector<1x128xf32> to vector<16x128xf32>
    %43 = arith.addf %41, %42 : vector<16x128xf32>
    %cst_8 = arith.constant 0.000000e+00 : f32
    %44 = vector.broadcast %cst_8 : f32 to vector<16x128xf32>
    %45 = arith.maximumf %43, %44 : vector<16x128xf32>
    %cst_9 = arith.constant dense<0.000000e+00> : vector<16x128xf32>
    %46 = tpu.matmul %45, %3, %cst_9 {dimension_numbers = #tpu.dot_dimension_numbers<[1], [0], [0], [1], [0, 0, 1, 1], [], []>} : vector<16x128xf32>, vector<128x128xf32>, vector<16x128xf32> -> vector<16x128xf32>
    %47 = vector.broadcast %7 : vector<1x128xf32> to vector<16x128xf32>
    %48 = arith.addf %46, %47 : vector<16x128xf32>
    %cst_10 = arith.constant dense<0xFF800000> : vector<16xf32>
    %49 = vector.multi_reduction <maximumf>, %48, %cst_10 [1] : vector<16x128xf32> to vector<16xf32>
    %50 = vector.shape_cast %49 : vector<16xf32> to vector<16x1xf32>
    %51 = vector.broadcast %50 : vector<16x1xf32> to vector<16x128xf32>
    %52 = arith.subf %48, %51 : vector<16x128xf32>
    %53 = math.exp %52 : vector<16x128xf32>
    %cst_11 = arith.constant dense<0.000000e+00> : vector<16xf32>
    %54 = vector.multi_reduction <add>, %53, %cst_11 [1] : vector<16x128xf32> to vector<16xf32>
    %55 = vector.shape_cast %54 : vector<16xf32> to vector<16x1xf32>
    %56 = vector.broadcast %55 : vector<16x1xf32> to vector<16x128xf32>
    %57 = arith.divf %53, %56 : vector<16x128xf32>
    %c0_12 = arith.constant 0 : index
    %c0_13 = arith.constant 0 : index
    %58 = vector.load %arg4[%c0_12, %c0_13] : memref<16x128xf32, #tpu.memory_space<vmem>>, vector<16x128xf32>
    tpu.vector_store %arg4[%c0_12, %c0_13], %57 {strides = array<i32>} : memref<16x128xf32, #tpu.memory_space<vmem>>, vector<16x128xf32>,
    return
  }
  func.func @transform_0(%arg0: i32) -> (i32, i32) {
    %c0_i32 = arith.constant 0 : i32
    %c0_i32_0 = arith.constant 0 : i32
    return %arg0, %c0_i32 : i32, i32
  }
  func.func @transform_1(%arg0: i32) -> (i32, i32) {
    %c0_i32 = arith.constant 0 : i32
    %c0_i32_0 = arith.constant 0 : i32
    %c0_i32_1 = arith.constant 0 : i32
    return %c0_i32, %c0_i32_0 : i32, i32
  }
  func.func @transform_2(%arg0: i32) -> (i32, i32) {
    %c0_i32 = arith.constant 0 : i32
    %c0_i32_0 = arith.constant 0 : i32
    %c0_i32_1 = arith.constant 0 : i32
    return %c0_i32, %c0_i32_0 : i32, i32
  }
  func.func @transform_3(%arg0: i32) -> (i32, i32) {
    %c0_i32 = arith.constant 0 : i32
    %c0_i32_0 = arith.constant 0 : i32
    return %arg0, %c0_i32 : i32, i32
  }
}

</mosaic_0001>

<bundles_post_ra>
// kernel: policy_net_forward.1
= control target key start
LH: loop header
LB: loop body
LE: loop exit
PB: predicated region body
PF: predicated region fallthrough
CT: control target
= control target key end

     0   :  { %8 = vsyncpa [#allocation3], 0  ;;  %s789_s12 = smov 0   ;;  %s848_s0 = inlined_call_operand.vmem [shape: f32[32,5], index: 0, kind: input, shape index: {}]   ;;  %s849_s1 = inlined_call_operand.hbm [shape: f32[264,128], index: 1, kind: input, shape index: {}]   ;;  %s850_s2 = inlined_call_operand.vmem [shape: f32[8,128], index: 2, kind: input, shape index: {}]   ;;  %s851_s3 = inlined_call_operand.vmem [shape: f32[32,128], index: 3, kind: output, shape index: {}]  }
   0x1 LB: > { %s561_s13 = sadd.s32 4294967295, %s759_s12   ;;  %p563_p0 = scmp.ge.s32.totalorder %s759_s12, 1  ;;  %s759_s12 = sphi %s789_s12, %s14_s12  }
   0x2   : > { %p113_p1 = scmp.lt.s32.totalorder %s759_s12, 3  ;;  %s761_s14 = smov [#allocation2]  }
   0x3   : > { %s125_s15 = sshll.u32 %s761_s14, 4  ;;  %p801_p3 = scmp.eq.s32.totalorder %s561_s13, 0  ;;  %s126_s15 = int_to_ptr.vmem [resolvable:$true] %s125_s15 }
   0x4   : > { %p797_p2 = pnand %p563_p0, %p113_p1  ;;  %s734_s18 = scalar_lea.vmem %s126_s15, 4224 }
   0x5   : > { %p735_p7 = scmp.ne.s32.totalorder %s126_s15, %s734_s18  ;;  %p742_p10 = scmp.lt.s32.totalorder %s126_s15, %s126_s15 }
   0x6   : > { %p684_p4 = pneg %p797_p2  ;;  %p743_p11 = scmp.lt.s32.totalorder %s734_s18, %s734_s18 }
   0x8   : > { %p685_p5 = pnand %p801_p3, %p684_p4  ;;  %p744_p12 = por %p743_p11, %p742_p10 }
   0xa   : > { %p725_p6 = pneg %p685_p5 }
   0xc   : > { %p737_p8 = pnand %p735_p7, %p725_p6 }
   0xe   : > { %p738_p9 = pneg %p737_p8 }
  0x10   : > { %p745_p13 = pnand %p744_p12, %p738_p9 }
  0x12   : > { %748 = shalt.err (!%p745_p13)
}
  0x13   : > { %s762_s19 = smov 128   ;;  %s763_s20 = smov 8  }
  0x14   : > { %687 = dma.hbm_to_vmem [thread:$0]  (!%p685_p5), %s849_s1, 4224, %s126_s15, [#allocation3], %s762_s19, %s762_s19, %s763_s20  }
  0x15   : > { %153 = sbr.rel (%p797_p2) target bundleno = 898 (0x382), region = 32 }
  0x1a   : > { %754 = dma.done.wait (%p801_p3), [#allocation3], 4224  }
  0x1b   : > { %756 = vsyncadd (%p801_p3), [#allocation3], 4294963072  ;;  %s568_s23 = sshll.u32 %s561_s13, 1  ;;  %v764_v0 = vmov 0   ;;  %v207_v3 = vld [vmem:[#allocation2 + $0x80] sm:$0xff]  ;;  %v206_v4 = vld [vmem:[#allocation2 + $0x78] sm:$0xff]  ;;  %v235_v35 = vlaneseq }
  0x1c   : > { %708 = vset.pattern.permute.xlu1 %v764_v0  ;;  %706 = vset.pattern.permute.xlu0 %v764_v0  ;;  %p178_p0 = scmp.lt.s32.totalorder %s568_s23, 3  ;;  %v765_v5 = vmov 1   ;;  %v205_v6 = vld [vmem:[#allocation2 + $0x70] sm:$0xff]  ;;  %v204_v7 = vld [vmem:[#allocation2 + $0x68] sm:$0xff]  ;;  %v766_v8 = vmov 2   ;;  %v203_v9 = vld [vmem:[#allocation2 + $0x60] sm:$0xff] }
  0x1d   : > { %610 = vmatprep.subr.mxu0 %v207_v3  ;;  %v767_v10 = vmov 3   ;;  %v768_v11 = vmov 4   ;;  %v202_v12 = vld [vmem:[#allocation2 + $0x58] sm:$0xff]  ;;  %v201_v13 = vld [vmem:[#allocation2 + $0x50] sm:$0xff]  ;;  %v200_v14 = vld [vmem:[#allocation2 + $0x48] sm:$0xff]  ;;  %v826_v36 = vshrl.u32 %v235_v35, 7 }
  0x1e   : > { %s855_s23 = smov (!%p178_p0, %s568_s23), 3  ;;  %611 = vmatpush3.msra.mxu0 %v207_v3  ;;  %v199_v15 = vld [vmem:[#allocation2 + $0x40] sm:$0xff]  ;;  %v198_v16 = vld [vmem:[#allocation2 + $0x38] sm:$0xff]  ;;  %v197_v17 = vld [vmem:[#allocation2 + $0x30] sm:$0xff] }
  0x1f   : > { %s569_s24 = sshll.u32 %s855_s23, 3  ;;  %612 = vmatprep.subr.mxu0 %v206_v4  ;;  %v196_v18 = vld [vmem:[#allocation2 + $0x28] sm:$0xff]  ;;  %v195_v19 = vld [vmem:[#allocation2 + $0x20] sm:$0xff]  ;;  %v222_v21 = vld [vmem:[#allocation2 + $0xf8] sm:$0xff]  ;;  %v237_v39 = vsub.s32 0, %v826_v36  ;;  %v251_v40 = vsub.s32 1, %v826_v36 }
  0x20   : > { %s181_s27 = scalar_lea.vmem %s848_s0, %s569_s24  ;;  %613 = vmatpush3.msra.mxu0 %v206_v4  ;;  %v223_v20 = vld [vmem:[#allocation2 + $0x100] sm:$0xff]  ;;  %v194_v22 = vld [vmem:[#allocation2 + $0x18] sm:$0xff]  ;;  %v221_v23 = vld [vmem:[#allocation2 + $0xf0] sm:$0xff]  ;;  %v267_v42 = vsub.s32 2, %v826_v36  ;;  %v283_v50 = vsub.s32 3, %v826_v36  ;;  %v299_v51 = vsub.s32 4, %v826_v36  ;;  %s187_s5 = scalar_lea.vmem %s851_s3, %s569_s24 }
  0x21   : > { %v190_v1 = vld [vmem:[%s181_s27 + $0x8] sm:$0xff]  ;;  %v189_v2 = vld [vmem:[%s181_s27] sm:$0xff]  ;;  %614 = vmatprep.subr.mxu0 %v205_v6  ;;  %645 = vmatprep.subr.mxu1 %v223_v20  ;;  %v193_v24 = vld [vmem:[#allocation2 + $0x10] sm:$0xff] }
  0x22   : > { %232 = vperm.xlu1 %708, %v190_v1   ;;  %227 = vperm.xlu0 %706, %v189_v2   ;;  %v220_v25 = vld [vmem:[#allocation2 + $0xe8] sm:$0xff]  ;;  %v219_v27 = vld [vmem:[#allocation2 + $0xe0] sm:$0xff]  ;;  %v218_v28 = vld [vmem:[#allocation2 + $0xd8] sm:$0xff] }
  0x23   : > { %615 = vmatpush3.msra.mxu0 %v205_v6  ;;  %646 = vmatpush3.msra.mxu1 %v223_v20  ;;  %v192_v26 = vld [vmem:[#allocation2 + $0x8] sm:$0xff]  ;;  %v217_v29 = vld [vmem:[#allocation2 + $0xd0] sm:$0xff]  ;;  %v215_v31 = vld [vmem:[#allocation2 + $0xc0] sm:$0xff] }
  0x24   : > { %616 = vmatprep.subr.mxu0 %v204_v7  ;;  %647 = vmatprep.subr.mxu1 %v222_v21  ;;  %v216_v30 = vld [vmem:[#allocation2 + $0xc8] sm:$0xff]  ;;  %v214_v32 = vld [vmem:[#allocation2 + $0xb8] sm:$0xff]  ;;  %v213_v33 = vld [vmem:[#allocation2 + $0xb0] sm:$0xff] }
  0x25   : > { %617 = vmatpush3.msra.mxu0 %v204_v7  ;;  %648 = vmatpush3.msra.mxu1 %v222_v21  ;;  %v212_v34 = vld [vmem:[#allocation2 + $0xa8] sm:$0xff]  ;;  %v191_v41 = vld [vmem:[#allocation2] sm:$0xff]  ;;  %v209_v20 = vld [vmem:[#allocation2 + $0x90] sm:$0xff] }
  0x26   : > { %709 = vset.pattern.permute.xlu1 %v765_v5  ;;  %707 = vset.pattern.permute.xlu0 %v765_v5  ;;  %v238_v45 = vrot.slane %v191_v41, %v237_v39  ;;  %v252_v46 = vrot.slane %v191_v41, %v251_v40  ;;  %v268_v47 = vrot.slane %v191_v41, %v267_v42  ;;  %v224_v60 = vld [vmem:[%s850_s2] sm:$0xff]  ;;  %v208_v21 = vld [vmem:[#allocation2 + $0x88] sm:$0xff] }
  0x27   : > { %246 = vperm.xlu1 %709, %v190_v1   ;;  %242 = vperm.xlu0 %707, %v189_v2   ;;  %v284_v56 = vrot.slane %v191_v41, %v283_v50  ;;  %v300_v57 = vrot.slane %v191_v41, %v299_v51 }
  0x28   : > { %618 = vmatprep.subr.mxu0 %v203_v9  ;;  %649 = vmatprep.subr.mxu1 %v221_v23 }
  0x29   : > { %619 = vmatpush3.msra.mxu0 %v203_v9  ;;  %650 = vmatpush3.msra.mxu1 %v221_v23 }
  0x2a   : > { %620 = vmatprep.subr.mxu0 %v202_v12  ;;  %651 = vmatprep.subr.mxu1 %v220_v25 }
  0x2b   : > { %710 = vset.pattern.permute.xlu1 %v766_v8  ;;  %711 = vset.pattern.permute.xlu0 %v766_v8 }
  0x2c   : > { %258 = vperm.xlu1 %710, %v189_v2   ;;  %262 = vperm.xlu0 %711, %v190_v1  }
  0x2d   : > { %621 = vmatpush3.msra.mxu0 %v202_v12  ;;  %652 = vmatpush3.msra.mxu1 %v220_v25 }
  0x2e   : > { %622 = vmatprep.subr.mxu0 %v201_v13  ;;  %653 = vmatprep.subr.mxu1 %v219_v27 }
  0x2f   : > { %623 = vmatpush3.msra.mxu0 %v201_v13  ;;  %654 = vmatpush3.msra.mxu1 %v219_v27 }
  0x30   : > { %712 = vset.pattern.permute.xlu1 %v767_v10  ;;  %713 = vset.pattern.permute.xlu0 %v768_v11 }
  0x31   : > { %274 = vperm.xlu1 %712, %v189_v2   ;;  %290 = vperm.xlu0 %713, %v189_v2   ;;  %v308_v2 = vrot.slane %v224_v60, %v237_v39 }
  0x32   : > { %624 = vmatprep.subr.mxu0 %v200_v14  ;;  %655 = vmatprep.subr.mxu1 %v218_v28 }
  0x33   : > { %625 = vmatpush3.msra.mxu0 %v200_v14  ;;  %656 = vmatpush3.msra.mxu1 %v218_v28 }
  0x34   : > { %626 = vmatprep.subr.mxu0 %v199_v15  ;;  %657 = vmatprep.subr.mxu1 %v217_v29 }
  0x35   : > { %278 = vperm.xlu1 %712, %v190_v1   ;;  %627 = vmatpush3.msra.mxu0 %v199_v15 }
  0x36   : > { %628 = vmatprep.subr.mxu0 %v198_v16  ;;  %658 = vmatpush3.msra.mxu1 %v217_v29  ;;  %v397_v29 = vrot.slane %v224_v60, %v267_v42 }
  0x37   : > { %629 = vmatpush3.msra.mxu0 %v198_v16  ;;  %659 = vmatprep.subr.mxu1 %v216_v30 }
  0x38   : > { %630 = vmatprep.subr.mxu0 %v197_v17  ;;  %660 = vmatpush3.msra.mxu1 %v216_v30 }
  0x39   : > { %714 = vset.pattern.permute.xlu1 %v768_v11  ;;  %631 = vmatpush3.msra.mxu0 %v197_v17 }
  0x3a   : > { %294 = vperm.xlu1 %714, %v190_v1   ;;  %632 = vmatprep.subr.mxu0 %v196_v18 }
  0x3b   : > { %633 = vmatpush3.msra.mxu0 %v196_v18  ;;  %661 = vmatprep.subr.mxu1 %v215_v31  ;;  %v211_v18 = vld [vmem:[#allocation2 + $0xa0] sm:$0xff] }
  0x3c   : > { %634 = vmatprep.subr.mxu0 %v195_v19  ;;  %662 = vmatpush3.msra.mxu1 %v215_v31 }
  0x3d   : > { %635 = vmatpush3.msra.mxu0 %v195_v19  ;;  %663 = vmatprep.subr.mxu1 %v214_v32  ;;  %v210_v19 = vld [vmem:[#allocation2 + $0x98] sm:$0xff] }
  0x3e   : > { %636 = vmatprep.subr.mxu0 %v194_v22  ;;  %664 = vmatpush3.msra.mxu1 %v214_v32 }
  0x3f   : > { %637 = vmatpush3.msra.mxu0 %v194_v22  ;;  %665 = vmatprep.subr.mxu1 %v213_v33  ;;  %v316_v22 = vrot.slane %v224_v60, %v251_v40 }
  0x40   : > { %638 = vmatprep.subr.mxu0 %v193_v24  ;;  %666 = vmatpush3.msra.mxu1 %v213_v33 }
  0x41   : > { %639 = vmatpush3.msra.mxu0 %v193_v24  ;;  %667 = vmatprep.subr.mxu1 %v212_v34 }
  0x42   : > { %640 = vmatprep.subr.mxu0 %v192_v26  ;;  %668 = vmatpush3.msra.mxu1 %v212_v34 }
  0x43   : > { %641 = vmatpush3.msra.mxu0 %v192_v26  ;;  %669 = vmatprep.subr.mxu1 %v211_v18 }
  0x44   : > { %670 = vmatpush3.msra.mxu1 %v211_v18 }
  0x45   : > { %671 = vmatprep.subr.mxu1 %v210_v19 }
  0x46   : > { %672 = vmatpush3.msra.mxu1 %v210_v19 }
  0x47   : > { %673 = vmatprep.subr.mxu1 %v209_v20 }
  0x48   : > { %674 = vmatpush3.msra.mxu1 %v209_v20 }
  0x49   : > { %675 = vmatprep.subr.mxu1 %v208_v21 }
  0x4a   : > { %676 = vmatpush3.msra.mxu1 %v208_v21 }
  0x9d   : > { %v233_v37 = vpop.permute.xlu1 %232  ;;  %v228_v38 = vpop.permute.xlu0 %227 }
  0x9e   : > { %v239_v48 = vmul.f32 %v238_v45, %v228_v38  ;;  %v240_v3 = vmul.f32 %v238_v45, %v233_v37 }
  0xa2   : > { %v247_v43 = vpop.permute.xlu1 %246  ;;  %v243_v44 = vpop.permute.xlu0 %242 }
  0xa3   : > { %v253_v49 = vmul.f32 %v252_v46, %v243_v44  ;;  %v254_v0 = vmul.f32 %v252_v46, %v247_v43 }
  0xa5   : > { %v255_v54 = vadd.f32 %v253_v49, %v239_v48  ;;  %v256_v7 = vadd.f32 %v254_v0, %v240_v3 }
  0xa7   : > { %v259_v52 = vpop.permute.xlu1 %258  ;;  %v263_v53 = vpop.permute.xlu0 %262 }
  0xa8   : > { %v269_v55 = vmul.f32 %v268_v47, %v259_v52  ;;  %v270_v4 = vmul.f32 %v268_v47, %v263_v53 }
  0xaa   : > { %v271_v61 = vadd.f32 %v269_v55, %v255_v54  ;;  %v272_v10 = vadd.f32 %v270_v4, %v256_v7 }
  0xac   : > { %v275_v58 = vpop.permute.xlu1 %274  ;;  %v291_v59 = vpop.permute.xlu0 %290 }
  0xad   : > { %v285_v62 = vmul.f32 %v284_v56, %v275_v58  ;;  %v301_v63 = vmul.f32 %v300_v57, %v291_v59 }
  0xaf   : > { %v287_v1 = vadd.f32 %v285_v62, %v271_v61 }
  0xb0   : > { %v279_v5 = vpop.permute.xlu1 %278 }
  0xb1   : > { %v303_v6 = vadd.f32 %v301_v63, %v287_v1  ;;  %v286_v8 = vmul.f32 %v284_v56, %v279_v5 }
  0xb3   : > { %v309_v9 = vadd.f32 %v308_v2, %v303_v6  ;;  %v288_v13 = vadd.f32 %v286_v8, %v272_v10 }
  0xb5   : > { %v295_v11 = vpop.permute.xlu1 %294  ;;  %v311_v12 = vmax.f32 %v309_v9, 0.0 }
  0xb6   : > { %v302_v14 = vmul.f32 %v300_v57, %v295_v11 }
  0xb7   : > { %642 = vmatprep.mubr.f32.mxu0 %v311_v12 }
  0xb8   : > { %v304_v15 = vadd.f32 %v302_v14, %v288_v13 }
  0xba   : > { %v310_v16 = vadd.f32 %v308_v2, %v304_v15 }
  0xbc   : > { %v312_v17 = vmax.f32 %v310_v16, 0.0 }
  0xbe   : > { %643 = vmatmul.mubr.f32.vlgmr.msra.gmra.mxu0 %v312_v17 }
 0x17e   : > { %v644_v23 = vpop.f32.mrf.mxu0 }
 0x17f   : > { %v389_v24 = vadd.f32 %v644_v23, %v316_v22 }
 0x180   : > { %v383_v25 = vpop.f32.mrf.mxu0 }
 0x181   : > { %v384_v26 = vadd.f32 %v383_v25, %v316_v22  ;;  %v393_v28 = vmax.f32 %v389_v24, 0.0 }
 0x183   : > { %v392_v27 = vmax.f32 %v384_v26, 0.0 }
 0x185   : > { %677 = vmatprep.mubr.f32.mxu1 %v392_v27 }
 0x186   : > { %678 = vmatmul.mubr.f32.vlgmr.msra.gmra.mxu1 %v393_v28 }
 0x246   : > { %v679_v30 = vpop.f32.mrf.mxu1 }
 0x247   : > { %v470_v31 = vadd.f32 %v679_v30, %v397_v29 }
 0x248   : > { %v464_v32 = vpop.f32.mrf.mxu1 }
 0x249   : > { %v465_v33 = vadd.f32 %v464_v32, %v397_v29  ;;  %475 = vmax.xlane.f32.xlu0 %v470_v31 }
 0x24b   : > { %473 = vmax.xlane.f32.xlu1 %v465_v33 }
 0x2d2   : > { %v476_v34 = vpop.xlane.xlu0 %475 }
 0x2d3   : > { %v478_v35 = vsub.f32 %v470_v31, %v476_v34 }
 0x2d4   : > { %v474_v37 = vpop.xlane.xlu1 %473 }
 0x2d5   : > { %v481_v38 = vmul.f32 1.442695, %v478_v35  ;;  %v477_v39 = vsub.f32 %v465_v33, %v474_v37 }
 0x2d7   : > { %715 = vpow2.f32 %v481_v38  ;;  %v479_v40 = vmul.f32 1.442695, %v477_v39 }
 0x2d9   : > { %717 = vpow2.f32 %v479_v40 }
 0x2e4   : > { %v716_v41 = vpop.eup %715 }
 0x2e5   : > { %485 = vadd.xlane.f32.xlu1 %v716_v41 }
 0x2e6   : > { %v718_v43 = vpop.eup %717 }
 0x2e7   : > { %483 = vadd.xlane.f32.xlu0 %v718_v43 }
 0x36e   : > { %v486_v36 = vpop.xlane.xlu1 %485 }
 0x36f   : > { %719 = vrcp.f32 %v486_v36 }
 0x370   : > { %v484_v42 = vpop.xlane.xlu0 %483 }
 0x371   : > { %721 = vrcp.f32 %v484_v42 }
 0x37c   : > { %v720_v44 = vpop.eup %719 }
 0x37d   : > { %v490_v47 = vmul.f32 %v720_v44, %v716_v41 }
 0x37e   : > { %v722_v45 = vpop.eup %721 }
 0x37f   : > { %v488_v46 = vmul.f32 %v722_v45, %v718_v43  ;;  %492 = vst [vmem:[%s187_s5 + $0x8] sm:$0xff] %v490_v47 }
 0x381   : > { %491 = vst [vmem:[%s187_s5] sm:$0xff] %v488_v46 }
 0x382 PF: > { %s14_s12 = sadd.s32 1, %s759_s12  }
 0x383   : > { %p11_p1 = scmp.ge.s32.totalorder %s14_s12, 4  }
 0x385   :  { %13 = sbr.rel (!%p11_p1) target bundleno = 1 (0x1), region = 67 }
 0x38a   :  { %515 = vsyncpa [#allocation3], 1 }
 0x38b   :  { %517 = vsyncpa [#allocation3 + $0x1], 1 }

</bundles_post_ra>
